<compile_context>
chip_gen: v5e
topology: v5e:2x2
jax: 0.10.0
libtpu: 0.0.40
codegen_flags: <defaults>
</compile_context>

<pallas_src>
import math

import jax
import jax.numpy as jnp
from jax.experimental import pallas as pl
from jax.experimental.pallas import tpu as pltpu


def _round_up(x, m):
    return ((x + m - 1) // m) * m


# ---------------------------------------------------------------------------
# Positional encoding (glue, value-independent of x — depends only on shape)
# ---------------------------------------------------------------------------
def _get_emb(sin_inp):
    emb = jnp.stack([jnp.sin(sin_inp), jnp.cos(sin_inp)], axis=-1)
    return emb.reshape(sin_inp.shape[0], -1)


def positional_encoding_2d_nhwc(B, C, H, W, dtype=jnp.float32):
    """Matches positional_encodings.PositionalEncoding2D on an NHWC tensor."""
    channels = int(math.ceil(C / 4) * 2)
    inv_freq = 1.0 / (10000.0 ** (jnp.arange(0, channels, 2, dtype=jnp.float32) / channels))
    pos_x = jnp.arange(H, dtype=jnp.float32)
    pos_y = jnp.arange(W, dtype=jnp.float32)
    sin_inp_x = jnp.einsum("i,j->ij", pos_x, inv_freq)   # (H, channels//2)
    sin_inp_y = jnp.einsum("i,j->ij", pos_y, inv_freq)   # (W, channels//2)
    emb_x = _get_emb(sin_inp_x)[:, None, :]              # (H, 1, channels)
    emb_y = _get_emb(sin_inp_y)[None, :, :]              # (1, W, channels)
    emb = jnp.zeros((H, W, 2 * channels), dtype=jnp.float32)
    emb = emb.at[:, :, :channels].set(jnp.broadcast_to(emb_x, (H, W, channels)))
    emb = emb.at[:, :, channels:2 * channels].set(jnp.broadcast_to(emb_y, (H, W, channels)))
    penc = jnp.broadcast_to(emb[None, :, :, :C], (B, H, W, C))
    return penc.astype(dtype)  # NHWC


# ---------------------------------------------------------------------------
# Pallas kernel: fused (1x1conv+BN+relu) x2, channels-first / pixel-lane-dense
# ---------------------------------------------------------------------------
def combine_kernel(x_ref, a1_ref, pb_ref, a2_ref, b2_ref, o_ref):
    # x_ref : (1, C, tm)    pixel-lane-dense input tile (straight from NCHW)
    # a1_ref: (HID, C)      conv1 weight (image part), BN1 scale folded, transposed
    # pb_ref: (HID, tm)     precomputed positional projection + BN1 bias
    # a2_ref: (CO, HID)     conv2 weight, BN2 scale folded, transposed
    # b2_ref: (CO, 1)       BN2 bias (column broadcast)
    # o_ref : (1, CO, tm)   lane-dense output tile (already NCHW flatten order)
    x = x_ref[0]                                                   # (C, tm)
    h = jnp.dot(a1_ref[...], x, preferred_element_type=jnp.float32)
    h = jnp.maximum(h + pb_ref[...].astype(jnp.float32), 0.0)      # BN1 bias + ReLU (f32)
    o = jnp.dot(a2_ref[...], h.astype(a2_ref.dtype),
                preferred_element_type=jnp.float32)
    o = jnp.maximum(o + b2_ref[...], 0.0)                          # BN2 bias + ReLU
    o_ref[0] = o.astype(o_ref.dtype)


def _vmem_budget_bytes(C, HID, CO, tm, in_itemsize, out_itemsize):
    # Double-buffered tiles + weights, with 2x headroom; clamp to sane limits.
    per_buf = (C * tm * in_itemsize          # x tile
               + HID * tm * in_itemsize      # pos_bias tile
               + HID * C * in_itemsize       # a1
               + CO * HID * in_itemsize      # a2
               + CO * 4                      # b2
               + CO * tm * out_itemsize)     # output tile
    budget = 2 * per_buf * 2
    return int(max(32 << 20, min(64 << 20, budget)))


def combine_forward(x_r, a1, pos_bias, a2, b2c, *, tm, out_dtype=jnp.float32):
    """x_r: (B, C, HW_pad); returns (B, CO, HW_pad) in out_dtype."""
    B, C, HWp = x_r.shape
    HID = a1.shape[0]
    CO = a2.shape[0]
    assert HWp % tm == 0
    # Grid: pixel-tile axis LEADING (parallel, many iterations -> good megacore
    # occupancy on v7x), batch axis INNERMOST so pos_bias's block index stays
    # constant across consecutive steps and is fetched once per tile (not once
    # per tile per batch): total pos_bias HBM traffic = HID*HW bytes, ~B x less.
    grid = (HWp // tm, B)
    vmem_limit = _vmem_budget_bytes(
        C, HID, CO, tm, jnp.dtype(x_r.dtype).itemsize, jnp.dtype(out_dtype).itemsize)
    return pl.pallas_call(
        combine_kernel,
        out_shape=jax.ShapeDtypeStruct((B, CO, HWp), out_dtype),
        grid_spec=pltpu.PrefetchScalarGridSpec(
            num_scalar_prefetch=0,
            grid=grid,
            in_specs=[
                pl.BlockSpec((1, C, tm), lambda i, b: (b, 0, i)),
                pl.BlockSpec((HID, C), lambda i, b: (0, 0)),
                pl.BlockSpec((HID, tm), lambda i, b: (0, i)),   # reused across b
                pl.BlockSpec((CO, HID), lambda i, b: (0, 0)),
                pl.BlockSpec((CO, 1), lambda i, b: (0, 0)),
            ],
            out_specs=pl.BlockSpec((1, CO, tm), lambda i, b: (b, 0, i)),
        ),
        compiler_params=pltpu.CompilerParams(
            dimension_semantics=("parallel", "arbitrary"),
            vmem_limit_bytes=vmem_limit,
        ),
    )(x_r, a1, pos_bias, a2, b2c)


# ---------------------------------------------------------------------------
# Full module forward
# ---------------------------------------------------------------------------
def positional_encoding_2d_to_features(x_nchw, params, *, max_tm=8192,
                                        compute_dtype=jnp.float32,
                                        out_dtype=jnp.float32):
    """x_nchw: (B, C, H, W) float32  ->  (B, out_channels * H * W) in out_dtype."""
    B, C, H, W = x_nchw.shape
    HW = H * W
    HID = params["w1"].shape[1]
    CO = params["w2"].shape[1]

    s1 = params["s1"].reshape(-1)
    b1 = params["b1"].reshape(-1)
    s2 = params["s2"].reshape(-1)
    b2 = params["b2"].reshape(-1)

    # Fold BN scales into the 1x1-conv weights (inference-mode folding).
    w1s = params["w1"] * s1[None, :]                     # (2C, HID)
    a1 = jnp.transpose(w1s[:C, :])                       # (HID, C)   image-channel part
    w1p = w1s[C:, :]                                     # (C, HID)   positional part
    a2 = jnp.transpose(params["w2"] * s2[None, :])       # (CO, HID)
    b2c = b2.reshape(CO, 1).astype(jnp.float32)

    # Positional encoding depends only on (h, w): fold its conv1 projection and
    # the BN1 bias into one additive (HID, HW) term -> no concat, half the
    # contraction dim, no materialized (B, H, W, 2C) tensor.
    pos_pix = positional_encoding_2d_nhwc(1, C, H, W, jnp.float32)[0].reshape(HW, C)
    pos_bias = jnp.transpose(
        jnp.dot(pos_pix, w1p, precision=jax.lax.Precision.HIGHEST) + b1[None, :]
    )                                                    # (HID, HW)

    # Pixel-lane-dense layout straight from NCHW (pure reshape, no transpose).
    x_r = x_nchw.reshape(B, C, HW)

    # Choose a large, lane-aligned pixel tile (amortizes per-step overhead) and
    # pad pixels to a multiple of it.
    tm = min(max_tm, _round_up(HW, 128))
    HW_pad = _round_up(HW, tm)
    if HW_pad != HW:
        x_r = jnp.pad(x_r, ((0, 0), (0, 0), (0, HW_pad - HW)))
        pos_bias = jnp.pad(pos_bias, ((0, 0), (0, HW_pad - HW)))

    out = combine_forward(
        x_r.astype(compute_dtype),
        a1.astype(compute_dtype),
        pos_bias.astype(compute_dtype),
        a2.astype(compute_dtype),
        b2c,
        tm=tm,
        out_dtype=out_dtype,
    )                                                    # (B, CO, HW_pad)

    # (B, CO, HW) is already the NCHW flatten(1) order -> pure reshape.
    return out[:, :, :HW].reshape(B, CO * HW)


# ---------------------------------------------------------------------------
# Deterministic parameter construction (synthetic; BN folded for inference)
# ---------------------------------------------------------------------------
def make_params(key, in_channels, hidden_channels, out_channels, eps=1e-5):
    c2 = 2 * in_channels
    ks = jax.random.split(key, 10)

    w1 = jax.random.uniform(ks[0], (c2, hidden_channels), jnp.float32,
                            -1.0, 1.0) * (1.0 / math.sqrt(c2))
    w2 = jax.random.uniform(ks[1], (hidden_channels, out_channels), jnp.float32,
                            -1.0, 1.0) * (1.0 / math.sqrt(hidden_channels))

    g1 = 1.0 + 0.1 * jax.random.normal(ks[2], (hidden_channels,), jnp.float32)
    be1 = 0.05 * jax.random.normal(ks[3], (hidden_channels,), jnp.float32)
    mu1 = 0.1 * jax.random.normal(ks[4], (hidden_channels,), jnp.float32)
    var1 = 0.5 + jnp.abs(jax.random.normal(ks[5], (hidden_channels,), jnp.float32))

    g2 = 1.0 + 0.1 * jax.random.normal(ks[6], (out_channels,), jnp.float32)
    be2 = 0.05 * jax.random.normal(ks[7], (out_channels,), jnp.float32)
    mu2 = 0.1 * jax.random.normal(ks[8], (out_channels,), jnp.float32)
    var2 = 0.5 + jnp.abs(jax.random.normal(ks[9], (out_channels,), jnp.float32))

    s1 = g1 / jnp.sqrt(var1 + eps)
    b1 = be1 - mu1 * s1
    s2 = g2 / jnp.sqrt(var2 + eps)
    b2 = be2 - mu2 * s2

    return {
        "w1": w1, "s1": s1.reshape(1, -1), "b1": b1.reshape(1, -1),
        "w2": w2, "s2": s2.reshape(1, -1), "b2": b2.reshape(1, -1),
    }


# Pure-JAX reference for correctness checking (original concat formulation).
def reference_forward(x_nchw, params):
    B, C, H, W = x_nchw.shape
    x_nhwc = jnp.transpose(x_nchw, (0, 2, 3, 1))
    pos = positional_encoding_2d_nhwc(B, C, H, W, jnp.float32)
    xc = jnp.concatenate([x_nhwc, pos], axis=-1).reshape(B * H * W, 2 * C)
    h = jnp.einsum("mc,ch->mh", xc, params["w1"], precision=jax.lax.Precision.HIGHEST)
    h = jnp.maximum(h * params["s1"] + params["b1"], 0.0)
    o = jnp.einsum("mh,ho->mo", h, params["w2"], precision=jax.lax.Precision.HIGHEST)
    o = jnp.maximum(o * params["s2"] + params["b2"], 0.0)
    CO = params["w2"].shape[1]
    return jnp.transpose(o.reshape(B, H, W, CO), (0, 3, 1, 2)).reshape(B, CO * H * W)


if __name__ == "__main__":
    B, C, H, W = 2, 4, 16, 16
    hidden_channels, out_channels = 32, 16

    key = jax.random.PRNGKey(0)
    kx, kp = jax.random.split(key)
    x = jax.random.normal(kx, (B, C, H, W), dtype=jnp.float32)
    params = make_params(kp, C, hidden_channels, out_channels)

    ref = jax.block_until_ready(reference_forward(x, params))

    # float32 path (default)
    out = jax.block_until_ready(positional_encoding_2d_to_features(x, params))
    assert out.shape == (B, out_channels * H * W), out.shape
    assert jnp.all(jnp.isfinite(out))
    assert jnp.allclose(out, ref, rtol=1e-3, atol=1e-3), float(jnp.max(jnp.abs(out - ref)))

    # bfloat16 compute path (halves HBM bytes on this bandwidth-bound kernel;
    # worthwhile on v5e/v6e/v7x alike); f32 accumulation via preferred_element_type.
    out_bf16 = jax.block_until_ready(
        positional_encoding_2d_to_features(x, params, compute_dtype=jnp.bfloat16))
    assert out_bf16.shape == (B, out_channels * H * W)
    assert jnp.all(jnp.isfinite(out_bf16))
    assert jnp.allclose(out_bf16, ref, rtol=5e-2, atol=5e-2), \
        float(jnp.max(jnp.abs(out_bf16 - ref)))

    print("KERNEL_OK")
</pallas_src>

<mosaic_0001>
module attributes {stable_mosaic.version = 11 : i64} {
  func.func @combine_kernel(%arg0: i32, %arg1: i32, %arg2: memref<1x4x256xf32, #tpu.memory_space<vmem>>, %arg3: memref<32x4xf32, #tpu.memory_space<vmem>>, %arg4: memref<32x256xf32, #tpu.memory_space<vmem>>, %arg5: memref<16x32xf32, #tpu.memory_space<vmem>>, %arg6: memref<16x1xf32, #tpu.memory_space<vmem>>, %arg7: memref<1x16x256xf32, #tpu.memory_space<vmem>>) attributes {dimension_semantics = [#tpu.dimension_semantics<parallel>, #tpu.dimension_semantics<arbitrary>], iteration_bounds = array<i64: 1, 2>, scalar_prefetch = 0 : i64, scratch_operands = 0 : i64, tpu.core_type = #tpu.core_type<tc>, window_params = [{transform_indices = @transform_0, window_bounds = array<i64: 1, 4, 256>}, {pipeline_mode = #tpu.pipeline_mode<synchronous>, transform_indices = @transform_1, window_bounds = array<i64: 32, 4>}, {transform_indices = @transform_2, window_bounds = array<i64: 32, 256>}, {pipeline_mode = #tpu.pipeline_mode<synchronous>, transform_indices = @transform_3, window_bounds = array<i64: 16, 32>}, {pipeline_mode = #tpu.pipeline_mode<synchronous>, transform_indices = @transform_4, window_bounds = array<i64: 16, 1>}, {transform_indices = @transform_5, window_bounds = array<i64: 1, 16, 256>}]} {
    %c0 = arith.constant 0 : index
    %c0_0 = arith.constant 0 : index
    %c0_1 = arith.constant 0 : index
    %0 = vector.load %arg2[%c0, %c0_0, %c0_1] : memref<1x4x256xf32, #tpu.memory_space<vmem>>, vector<1x4x256xf32>
    %1 = vector.shape_cast %0 : vector<1x4x256xf32> to vector<4x256xf32>
    %c0_2 = arith.constant 0 : index
    %c0_3 = arith.constant 0 : index
    %2 = vector.load %arg3[%c0_2, %c0_3] : memref<32x4xf32, #tpu.memory_space<vmem>>, vector<32x4xf32>
    %cst = arith.constant dense<0.000000e+00> : vector<32x256xf32>
    %3 = tpu.matmul %2, %1, %cst {dimension_numbers = #tpu.dot_dimension_numbers<[1], [0], [0], [1], [0, 0, 1, 1], [], []>} : vector<32x4xf32>, vector<4x256xf32>, vector<32x256xf32> -> vector<32x256xf32>
    %c0_4 = arith.constant 0 : index
    %c0_5 = arith.constant 0 : index
    %4 = vector.load %arg4[%c0_4, %c0_5] : memref<32x256xf32, #tpu.memory_space<vmem>>, vector<32x256xf32>
    %5 = arith.addf %3, %4 : vector<32x256xf32>
    %cst_6 = arith.constant 0.000000e+00 : f32
    %6 = vector.broadcast %cst_6 : f32 to vector<32x256xf32>
    %7 = arith.maximumf %5, %6 : vector<32x256xf32>
    %c0_7 = arith.constant 0 : index
    %c0_8 = arith.constant 0 : index
    %8 = vector.load %arg5[%c0_7, %c0_8] : memref<16x32xf32, #tpu.memory_space<vmem>>, vector<16x32xf32>
    %cst_9 = arith.constant dense<0.000000e+00> : vector<16x256xf32>
    %9 = tpu.matmul %8, %7, %cst_9 {dimension_numbers = #tpu.dot_dimension_numbers<[1], [0], [0], [1], [0, 0, 1, 1], [], []>} : vector<16x32xf32>, vector<32x256xf32>, vector<16x256xf32> -> vector<16x256xf32>
    %c0_10 = arith.constant 0 : index
    %c0_11 = arith.constant 0 : index
    %10 = vector.load %arg6[%c0_10, %c0_11] : memref<16x1xf32, #tpu.memory_space<vmem>>, vector<16x1xf32>
    %11 = vector.broadcast %10 : vector<16x1xf32> to vector<16x256xf32>
    %12 = arith.addf %9, %11 : vector<16x256xf32>
    %cst_12 = arith.constant 0.000000e+00 : f32
    %13 = vector.broadcast %cst_12 : f32 to vector<16x256xf32>
    %14 = arith.maximumf %12, %13 : vector<16x256xf32>
    %c0_13 = arith.constant 0 : index
    %c0_14 = arith.constant 0 : index
    %c0_15 = arith.constant 0 : index
    %15 = vector.load %arg7[%c0_13, %c0_14, %c0_15] : memref<1x16x256xf32, #tpu.memory_space<vmem>>, vector<1x16x256xf32>
    %16 = vector.shape_cast %15 : vector<1x16x256xf32> to vector<16x256xf32>
    %17 = vector.shape_cast %14 : vector<16x256xf32> to vector<1x16x256xf32>
    tpu.vector_store %arg7[%c0_13, %c0_14, %c0_15], %17 {strides = array<i32>} : memref<1x16x256xf32, #tpu.memory_space<vmem>>, vector<1x16x256xf32>,
    return
  }
  func.func @transform_0(%arg0: i32, %arg1: i32) -> (i32, i32, i32) {
    %c0_i32 = arith.constant 0 : i32
    %c0_i32_0 = arith.constant 0 : i32
    return %arg1, %c0_i32, %arg0 : i32, i32, i32
  }
  func.func @transform_1(%arg0: i32, %arg1: i32) -> (i32, i32) {
    %c0_i32 = arith.constant 0 : i32
    %c0_i32_0 = arith.constant 0 : i32
    %c0_i32_1 = arith.constant 0 : i32
    return %c0_i32, %c0_i32_0 : i32, i32
  }
  func.func @transform_2(%arg0: i32, %arg1: i32) -> (i32, i32) {
    %c0_i32 = arith.constant 0 : i32
    %c0_i32_0 = arith.constant 0 : i32
    return %c0_i32, %arg0 : i32, i32
  }
  func.func @transform_3(%arg0: i32, %arg1: i32) -> (i32, i32) {
    %c0_i32 = arith.constant 0 : i32
    %c0_i32_0 = arith.constant 0 : i32
    %c0_i32_1 = arith.constant 0 : i32
    return %c0_i32, %c0_i32_0 : i32, i32
  }
  func.func @transform_4(%arg0: i32, %arg1: i32) -> (i32, i32) {
    %c0_i32 = arith.constant 0 : i32
    %c0_i32_0 = arith.constant 0 : i32
    %c0_i32_1 = arith.constant 0 : i32
    return %c0_i32, %c0_i32_0 : i32, i32
  }
  func.func @transform_5(%arg0: i32, %arg1: i32) -> (i32, i32, i32) {
    %c0_i32 = arith.constant 0 : i32
    %c0_i32_0 = arith.constant 0 : i32
    return %arg1, %c0_i32, %arg0 : i32, i32, i32
  }
}

</mosaic_0001>

<bundles_post_ra>
// kernel: tpu_custom_call.1
= control target key start
LH: loop header
LB: loop body
LE: loop exit
PB: predicated region body
PF: predicated region fallthrough
CT: control target
= control target key end

     0   :  { %10 = vsyncpa [#allocation3], 0  ;;  %s944_s0 = inlined_call_operand.vmem [shape: f32[2,4,256], index: 0, kind: input, shape index: {}]   ;;  %s945_s1 = inlined_call_operand.vmem [shape: f32[32,4], index: 1, kind: input, shape index: {}]   ;;  %s946_s2 = inlined_call_operand.hbm [shape: f32[32,256], index: 2, kind: input, shape index: {}]   ;;  %s947_s3 = inlined_call_operand.vmem [shape: f32[16,32], index: 3, kind: input, shape index: {}]   ;;  %s948_s4 = inlined_call_operand.vmem [shape: f32[16,1], index: 4, kind: input, shape index: {}]   ;;  %s949_s5 = inlined_call_operand.hbm [shape: f32[2,16,256], index: 5, kind: output, shape index: {}]  }
   0x1   :  { %11 = vsyncpa [#allocation4], 0 }
   0x2   :  { %13 = vsyncpa [#allocation4 + $0x1], 0  ;;  %s820_s18 = smov 0   ;;  %s822_s19 = smov 0  }
   0x3   :  { %s824_s20 = smov 0   ;;  %s826_s21 = smov 0  }
   0x4   :  { %s828_s22 = smov 0   ;;  %s830_s23 = smov 0  }
   0x5 LB: > { %s567_s24 = sadd.s32 4294967295, %s782_s23   ;;  %s568_s25 = sadd.s32 4294967294, %s782_s23   ;;  %s782_s23 = sphi %s830_s23, %s19_s23   ;;  %s778_s22 = sphi %s828_s22, %s956_s22   ;;  %s774_s21 = sphi %s826_s21, %s955_s21   ;;  %s770_s20 = sphi %s824_s20, %s954_s20   ;;  %s766_s19 = sphi %s822_s19, %s953_s19   ;;  %s762_s18 = sphi %s820_s18, %s952_s18  }
   0x6   : > { %s28_s26 = sadd.s32 1, %s778_s22  ;;  %s157_s27 = sadd.s32 1, %s770_s20 }
   0x7   : > { %p29_p0 = scmp.ge.s32.totalorder %s28_s26, 2  ;;  %p167_p1 = scmp.ne.s32.totalorder %s770_s20, %s766_s19 }
   0x8   : > { %p168_p2 = scmp.eq.s32.totalorder %s567_s24, 1  ;;  %p173_p3 = scmp.ne.s32.totalorder %s766_s19, %s762_s18 }
   0x9   : > { %s958_s26 = smov (%p29_p0, %s28_s26), 0  ;;  %p174_p5 = scmp.eq.s32.totalorder %s568_s25, 1 }
   0xa   : > { %p860_p4 = por %p168_p2, %p167_p1  ;;  %s152_s29 = ssub.s32 %s778_s22, %s958_s26 }
   0xb   : > { %p569_p6 = scmp.ge.s32.totalorder %s782_s23, 1  ;;  %p155_p7 = scmp.eq.s32.totalorder %s152_s29, 0 }
   0xc   : > { %p867_p8 = por %p174_p5, %p173_p3  ;;  %p181_p9 = scmp.lt.s32.totalorder %s782_s23, 3 }
   0xd   : > { %s873_s6 = scalar_select %p155_p7, %s770_s20, %s157_s27  }
   0xe   : > { %p182_p10 = pnand %p569_p6, %p181_p9  ;;  %p612_p11 = scmp.eq.s32.totalorder %s567_s24, 0 }
   0xf   : > { %s198_s9 = sshll.u32 %s946_s2, 4  ;;  %s784_s10 = smov [#allocation2]   ;;  %s199_s9 = int_to_ptr.hbm [resolvable:$true] %s198_s9 }
  0x10   : > { %p604_p12 = pneg %p182_p10  ;;  %s200_s11 = sshll.u32 %s784_s10, 4  ;;  %s201_s11 = int_to_ptr.vmem [resolvable:$true] %s200_s11 }
  0x11   : > { %s785_s12 = smov 256   ;;  %s786_s13 = smov 16  }
  0x12   : > { %p605_p13 = pnand %p612_p11, %p604_p12  ;;  %235 = sbr.rel (%p182_p10) target bundleno = 350 (0x15e), region = 40 }
  0x14   : > { %607 = dma.hbm_to_vmem [thread:$0]  (!%p605_p13), %s199_s9, 1024, %s201_s11, [#allocation3], %s785_s12, %s785_s12, %s786_s13  }
  0x17   : > { %753 = dma.done.wait (%p612_p11), [#allocation3], 1024  }
  0x18   : > { %755 = vsyncadd (%p612_p11), [#allocation3], 4294966272  ;;  %p269_p0 = scmp.lt.s32.totalorder %s774_s21, 1  ;;  %vm310_vm0 = vcmask 1043456   ;;  %v281_v1 = vld [vmem:[%s945_s1] sm:$0xff]  ;;  %vm297_vm1 = vcmask 31744  }
  0x19   : > { %v282_v4 = vld [vmem:[%s945_s1 + $0x8] sm:$0xff]  ;;  %v283_v5 = vld [vmem:[%s945_s1 + $0x10] sm:$0xff]  ;;  %v284_v6 = vld [vmem:[%s945_s1 + $0x18] sm:$0xff]  ;;  %v787_v9 = vmov 0   ;;  %vm395_vm2 = vcmask 261120   ;;  %s265_s27 = sand.u32 1, %s766_s19  }
  0x1a   : > { %s270_s14 = scalar_select %p269_p0, %s774_s21, 1  ;;  %669 = vset.pattern.permute.xlu0 %v787_v9  ;;  %v383_v12 = vld [vmem:[%s948_s4] sm:$0xff]  ;;  %v384_v15 = vld [vmem:[%s948_s4 + $0x8] sm:$0xff]  ;;  %v290_v17 = vld [vmem:[#allocation2 + $0x28] sm:$0xff] }
  0x1b   : > { %387 = vperm.xlu0 %669, %v383_v12   ;;  %v289_v16 = vld [vmem:[#allocation2 + $0x20] sm:$0xff]  ;;  %v291_v18 = vld [vmem:[#allocation2 + $0x30] sm:$0xff]  ;;  %v292_v19 = vld [vmem:[#allocation2 + $0x38] sm:$0xff]  ;;  %s574_s29 = sshll.u32 %s265_s27, 5  ;;  %s597_s7 = sshll.u32 %s774_s21, 5 }
  0x1c   : > { %s596_s15 = sshll.u32 %s270_s14, 3  ;;  %v287_v20 = vld [vmem:[#allocation2 + $0x10] sm:$0xff]  ;;  %v288_v21 = vld [vmem:[#allocation2 + $0x18] sm:$0xff]  ;;  %v285_v28 = vld [vmem:[#allocation2] sm:$0xff]  ;;  %s267_s8 = scalar_lea.vmem [#allocation5], %s574_s29 }
  0x1d   : > { %s276_s24 = scalar_lea.vmem %s944_s0, %s596_s15  ;;  %v286_v29 = vld [vmem:[#allocation2 + $0x8] sm:$0xff]  ;;  %v381_v42 = vld [vmem:[%s947_s3] sm:$0xff]  ;;  %v382_v43 = vld [vmem:[%s947_s3 + $0x8] sm:$0xff]  ;;  %s470_s11 = scalar_lea.hbm %s949_s5, %s597_s7 }
  0x1e   : > { %v280_v0 = vld [vmem:[%s276_s24] sm:$0xff]  ;;  %s471_s12 = sshll.u32 %s267_s8, 4  ;;  %s473_s13 = sshll.u32 %s470_s11, 4  ;;  %s472_s12 = int_to_ptr.vmem [resolvable:$true] %s471_s12  ;;  %s474_s13 = int_to_ptr.hbm [resolvable:$true] %s473_s13 }
  0x1f   : > { %294 = vst [vmem:[#allocation1] ss:$2 sm:$0xff] %v280_v0  ;;  %s457_s21 = scalar_lea.sflag [#allocation4], %s265_s27  ;;  %s714_s14 = sshra.s32 %s474_s13, 4  ;;  %s715_s14 = int_to_ptr.hbm [resolvable:$true] %s714_s14 }
  0x20   : > { %s716_s15 = scalar_lea.hbm %s715_s14, 32  ;;  %s720_s24 = scalar_lea.hbm %s949_s5, 64 }
  0x21   : > { %p717_p1 = scmp.ne.s32.totalorder %s715_s14, %s716_s15  ;;  %p721_p5 = scmp.lt.s32.totalorder %s715_s14, %s949_s5 }
  0x22   : > { %p722_p6 = scmp.lt.s32.totalorder %s720_s24, %s716_s15 }
  0x23   : > { %392 = vperm.xlu0 %669, %v384_v15   ;;  %p718_p2 = pnand %p717_p1, %p860_p4 }
  0x24   : > { %p723_p7 = por %p722_p6, %p721_p5 }
  0x25   : > { %p719_p3 = pneg %p718_p2 }
  0x26   : > { %v295_v2 = vld.sshfl [vmem:[#allocation1] sm:$0xff pattern:$0x75316420]  ;;  %v296_v3 = vld.sshfl [vmem:[#allocation1 + $0x8] sm:$0xff pattern:$0x75316420] }
  0x27   : > { %577 = vmatpush.msk.msra.mxu0 %vm310_vm0, %v295_v2  ;;  %582 = vmatpush.msk.msra.mxu1 %vm310_vm0, %v296_v3  ;;  %p724_p9 = pnand %p723_p7, %p719_p3 }
  0x28   : > { %578 = vmatmul.msk.f32.vlgmr.msra.gmra.mxu0 %vm297_vm1, %v281_v1  ;;  %583 = vmatmul.msk.f32.vlgmr.msra.gmra.mxu1 %vm297_vm1, %v281_v1 }
  0x30   : > { %579 = vmatmul.msk.f32.gmra.mxu0 %vm297_vm1, %v282_v4  ;;  %584 = vmatmul.msk.f32.gmra.mxu1 %vm297_vm1, %v282_v4 }
  0x38   : > { %580 = vmatmul.msk.f32.gmra.mxu0 %vm297_vm1, %v283_v5  ;;  %585 = vmatmul.msk.f32.gmra.mxu1 %vm297_vm1, %v283_v5 }
  0x40   : > { %581 = vmatmul.msk.f32.gmra.mxu0 %vm297_vm1, %v284_v6  ;;  %586 = vmatmul.msk.f32.gmra.mxu1 %vm297_vm1, %v284_v6 }
  0x8d   : > { %v388_v44 = vpop.permute.xlu0 %387 }
  0x95   : > { %v393_v51 = vpop.permute.xlu0 %392 }
  0xa5   : > { %v332_v7 = vpop.f32.mrf.mxu0  ;;  %v361_v8 = vpop.f32.mrf.mxu1 }
  0xa6   : > { %v333_v34 = vadd.f32 %v332_v7, %v285_v28  ;;  %v362_v35 = vadd.f32 %v361_v8, %v286_v29 }
  0xa8   : > { %v373_v40 = vmax.f32 %v333_v34, 0.0  ;;  %v374_v41 = vmax.f32 %v362_v35, 0.0 }
  0xad   : > { %v335_v10 = vpop.f32.mrf.mxu0  ;;  %v364_v11 = vpop.f32.mrf.mxu1 }
  0xae   : > { %v336_v30 = vadd.f32 %v335_v10, %v287_v20  ;;  %v365_v31 = vadd.f32 %v364_v11, %v288_v21 }
  0xb0   : > { %v375_v38 = vmax.f32 %v336_v30, 0.0  ;;  %v376_v39 = vmax.f32 %v365_v31, 0.0 }
  0xb5   : > { %v338_v13 = vpop.f32.mrf.mxu0  ;;  %v367_v14 = vpop.f32.mrf.mxu1 }
  0xb6   : > { %v339_v24 = vadd.f32 %v338_v13, %v289_v16  ;;  %v368_v25 = vadd.f32 %v367_v14, %v290_v17 }
  0xb8   : > { %v377_v36 = vmax.f32 %v339_v24, 0.0  ;;  %v378_v37 = vmax.f32 %v368_v25, 0.0 }
  0xbd   : > { %v341_v22 = vpop.f32.mrf.mxu0  ;;  %v370_v23 = vpop.f32.mrf.mxu1 }
  0xbe   : > { %v342_v26 = vadd.f32 %v341_v22, %v291_v18  ;;  %v371_v27 = vadd.f32 %v370_v23, %v292_v19 }
  0xc0   : > { %v379_v32 = vmax.f32 %v342_v26, 0.0  ;;  %v380_v33 = vmax.f32 %v371_v27, 0.0 }
  0xc2   : > { %414 = vmatpush.msra.mxu2 %v379_v32  ;;  %437 = vmatpush.msra.mxu3 %v380_v33 }
  0xc4   : > { %415 = vmatpush.msra.mxu2 %v377_v36  ;;  %438 = vmatpush.msra.mxu3 %v378_v37 }
  0xc6   : > { %416 = vmatpush.msra.mxu2 %v375_v38  ;;  %439 = vmatpush.msra.mxu3 %v376_v39 }
  0xc8   : > { %417 = vmatpush.msra.mxu2 %v373_v40  ;;  %440 = vmatpush.msra.mxu3 %v374_v41 }
  0xc9   : > { %587 = vmatmul.msk.f32.vlgmr.msra.gmra.mxu2 %vm395_vm2, %v381_v42  ;;  %589 = vmatmul.msk.f32.vlgmr.msra.gmra.mxu3 %vm395_vm2, %v381_v42 }
  0xd1   : > { %588 = vmatmul.msk.f32.gmra.mxu2 %vm395_vm2, %v382_v43  ;;  %590 = vmatmul.msk.f32.gmra.mxu3 %vm395_vm2, %v382_v43 }
 0x14c   : > { %v419_v45 = vpop.f32.mrf.mxu2  ;;  %v442_v46 = vpop.f32.mrf.mxu3 }
 0x14d   : > { %v420_v47 = vadd.f32 %v419_v45, %v388_v44  ;;  %v443_v48 = vadd.f32 %v442_v46, %v388_v44 }
 0x14f   : > { %v448_v49 = vmax.f32 %v420_v47, 0.0  ;;  %v449_v50 = vmax.f32 %v443_v48, 0.0 }
 0x151   : > { %452 = vst [vmem:[%s267_s8] sm:$0xff] %v448_v49 }
 0x152   : > { %453 = vst [vmem:[%s267_s8 + $0x8] sm:$0xff] %v449_v50 }
 0x154   : > { %v422_v52 = vpop.f32.mrf.mxu2  ;;  %v445_v53 = vpop.f32.mrf.mxu3 }
 0x155   : > { %v423_v54 = vadd.f32 %v422_v52, %v393_v51  ;;  %v446_v55 = vadd.f32 %v445_v53, %v393_v51 }
 0x157   : > { %v450_v56 = vmax.f32 %v423_v54, 0.0  ;;  %v451_v57 = vmax.f32 %v446_v55, 0.0 }
 0x159   : > { %454 = vst [vmem:[%s267_s8 + $0x10] sm:$0xff] %v450_v56 }
 0x15a   : > { %455 = vst [vmem:[%s267_s8 + $0x18] sm:$0xff] %v451_v57 }
 0x15b   : > { %727 = shalt.err (!%p724_p9)
}
 0x15c   : > { %s788_s27 = smov 256   ;;  %s789_s7 = smov 16  }
 0x15d   : > { %602 = dma.vmem_to_hbm [thread:$0]  (%p860_p4), %s472_s12, 512, %s474_s13, %s457_s21, %s788_s27, %s788_s27, %s789_s7  }
 0x15e PF: > { %p614_p10 = scmp.ge.s32.totalorder %s782_s23, 2  ;;  %s488_s8 = sand.u32 1, %s762_s18  }
 0x15f   : > { %s489_s9 = scalar_lea.sflag [#allocation4], %s488_s8 }
 0x160   : > { %p609_p11 = pnand %p614_p10, %p867_p8 }
 0x162   : > { %p610_p12 = pneg %p609_p11 }
 0x164   : > { %757 = dma.done.wait (%p610_p12), %s489_s9, 512  }
 0x165   : > { %759 = vsyncadd (%p610_p12), %s489_s9, 4294966784  ;;  %s19_s23 = sadd.s32 1, %s782_s23   ;;  %s952_s18 = smov %s766_s19 }
 0x166   : > { %p16_p13 = scmp.ge.s32.totalorder %s19_s23, 4   ;;  %s953_s19 = smov %s770_s20 }
 0x167   : > { %s954_s20 = smov %s873_s6  ;;  %s955_s21 = smov %s778_s22 }
 0x168   : > { %s956_s22 = smov %s958_s26  ;;  %18 = sbr.rel (!%p16_p13) target bundleno = 5 (0x5), region = 81 }
 0x16d   :  { %495 = vsyncpa [#allocation3], 1 }
 0x16e   :  { %497 = vsyncpa [#allocation3 + $0x1], 1 }
 0x16f   :  { %498 = vsyncpa [#allocation4], 1 }
 0x170   :  { %500 = vsyncpa [#allocation4 + $0x1], 1 }

</bundles_post_ra>
